<compile_context>
chip_gen: v5e
topology: v5e:2x2
jax: 0.10.0
libtpu: 0.0.40
codegen_flags: <defaults>
</compile_context>

<pallas_src>
import functools

import jax
import jax.numpy as jnp
from jax import lax
from jax.experimental import pallas as pl
from jax.experimental.pallas import tpu as pltpu


def _edge_loss_kernel(depth_ref, image_ref, out_ref,
                      acc_x_ref, acc_y_ref, carry_d_ref, carry_i_ref, *, inv_ci):
    h = pl.program_id(1)
    n_h = pl.num_programs(1)

    @pl.when(h == 0)
    def _init():
        acc_x_ref[...] = jnp.zeros_like(acc_x_ref)
        acc_y_ref[...] = jnp.zeros_like(acc_y_ref)

    d = depth_ref[...].astype(jnp.float32)    # (Cd, TH, W)
    im = image_ref[...].astype(jnp.float32)   # (Ci, TH, W)
    cd, th, w = d.shape

    # ---- x direction: |d[..., i] - d[..., i-1]| ------------------------------
    # pltpu.roll follows np.roll semantics: rolled[..., i] = x[..., i-1], so the
    # wrap term lands at index 0 and is masked out below.
    d_xm = pltpu.roll(d, 1, axis=2)
    im_xm = pltpu.roll(im, 1, axis=2)
    col = lax.broadcasted_iota(jnp.int32, (1, th, w), 2)
    gdx = jnp.where(col != 0, jnp.abs(d - d_xm), 0.0)
    gix = jnp.sum(jnp.abs(im - im_xm), axis=0) * inv_ci          # (TH, W)
    lx = gdx * jnp.exp(-gix)[None, :, :]

    # ---- y direction, in-tile: rows 1..TH-1 ----------------------------------
    d_ym = pltpu.roll(d, 1, axis=1)
    im_ym = pltpu.roll(im, 1, axis=1)
    row = lax.broadcasted_iota(jnp.int32, (1, th, w), 1)
    gdy = jnp.where(row != 0, jnp.abs(d - d_ym), 0.0)
    giy = jnp.sum(jnp.abs(im - im_ym), axis=0) * inv_ci
    ly = gdy * jnp.exp(-giy)[None, :, :]

    # ---- per-step accumulate: reduce only over vreg-slab axes (VPU adds) -----
    if th % 8 == 0:
        # (Cd, TH, W) -> (Cd*TH/8, 8, W) is a free relabeling of whole sublane
        # tiles; summing over the leading axis is pure vreg adds.
        acc_x_ref[...] += jnp.sum(lx.reshape(-1, 8, w), axis=0)
        acc_y_ref[...] += jnp.sum(ly.reshape(-1, 8, w), axis=0)
    else:
        # Rare fallback: H itself is not a multiple of 8 (single full-H tile).
        acc_x_ref[0:1, :] += jnp.sum(lx, axis=(0, 1))[None, :]
        acc_y_ref[0:1, :] += jnp.sum(ly, axis=(0, 1))[None, :]

    # ---- y direction, tile boundary: first row of this tile vs. carried last
    # row of the previous H tile of the same batch image. ----------------------
    @pl.when(h > 0)
    def _boundary():
        gdyb = jnp.sum(jnp.abs(d[:, 0:1, :] - carry_d_ref[...]), axis=0)        # (1, W)
        giyb = jnp.sum(jnp.abs(im[:, 0:1, :] - carry_i_ref[...]), axis=0) * inv_ci
        acc_y_ref[0:1, :] += gdyb * jnp.exp(-giyb)

    # Carry the last row forward for the next H tile.
    carry_d_ref[...] = d[:, th - 1:th, :]
    carry_i_ref[...] = im[:, th - 1:th, :]

    # ---- per-batch partial sums: ONE cross-lane/sublane reduce per batch -----
    @pl.when(h == n_h - 1)
    def _finalize():
        sx = jnp.sum(acc_x_ref[...])
        sy = jnp.sum(acc_y_ref[...])
        r = lax.broadcasted_iota(jnp.int32, (2, 128), 0)
        out_ref[...] = jnp.where(r == 0, sx, sy)


def _vmem_capacity_bytes():
    try:
        info = pltpu.get_tpu_info()
        cap = getattr(info, "vmem_capacity_bytes", None)
        if cap:
            return int(cap)
    except Exception:
        pass
    return 64 * 2**20   # conservative: v7x per-TensorCore VMEM


def _sublane_multiple(*dtypes):
    """Smallest sublane multiple keeping packed dtypes in native layout
    (f32 -> 8, bf16 -> 16, int8/fp8 -> 32)."""
    m = 8
    for dt in dtypes:
        m = max(m, 32 // jnp.dtype(dt).itemsize)
    return m


def _pick_tile_h(H, W, Cd, Ci, sub, budget):
    """Largest H tile that divides H, is a multiple of `sub`, and keeps the
    combined f32 working set of one (depth + image) tile under `budget`."""
    cands = [t for t in range(sub, H + 1, sub) if H % t == 0]
    if not cands:
        return H                                   # one full-height tile
    fitting = [t for t in cands if (Cd + Ci) * t * W * 4 <= budget]
    return max(fitting) if fitting else min(cands)


def edge_aware_smoothness_loss(inv_depth_map, image, tile_h=None):
    """Edge-aware smoothness loss.  Pass bf16 inputs where possible (the kernel
    upcasts internally); this halves HBM traffic of a memory-bound kernel."""
    B, Cd, H, W = inv_depth_map.shape
    Bi, Ci, Hi, Wi = image.shape
    assert (B, H, W) == (Bi, Hi, Wi), "depth / image spatial shapes must match"

    sub = _sublane_multiple(inv_depth_map.dtype, image.dtype)
    vmem_cap = _vmem_capacity_bytes()
    budget = 2 * 2**20 if vmem_cap <= 64 * 2**20 else 4 * 2**20

    if tile_h is None:
        TH = _pick_tile_h(H, W, Cd, Ci, sub, budget)
    else:
        assert H % tile_h == 0 and (tile_h % sub == 0 or tile_h == H)
        TH = tile_h
    n_h = H // TH

    n_x = B * Cd * H * (W - 1)   # number of elements in loss_x
    n_y = B * Cd * (H - 1) * W   # number of elements in loss_y

    kernel = functools.partial(_edge_loss_kernel, inv_ci=1.0 / Ci)

    in_bytes = (B * Cd * H * W * jnp.dtype(inv_depth_map.dtype).itemsize
                + B * Ci * H * W * jnp.dtype(image.dtype).itemsize)
    cost = pl.CostEstimate(
        flops=10 * B * (Cd + Ci) * H * W,
        transcendentals=2 * B * H * W,
        bytes_accessed=in_bytes + B * 2 * 128 * 4)

    tile_f32_bytes = (Cd + Ci) * TH * W * 4
    vmem_limit = int(min(vmem_cap - 16 * 2**20,
                         max(32 * 2**20, 12 * tile_f32_bytes)))
    vmem_limit = max(vmem_limit, 16 * 2**20)

    partials = pl.pallas_call(
        kernel,
        out_shape=jax.ShapeDtypeStruct((B, 2, 128), jnp.float32),
        grid_spec=pltpu.PrefetchScalarGridSpec(
            num_scalar_prefetch=0,
            grid=(B, n_h),
            in_specs=[
                pl.BlockSpec((None, Cd, TH, W), lambda b, h: (b, 0, h, 0)),
                pl.BlockSpec((None, Ci, TH, W), lambda b, h: (b, 0, h, 0)),
            ],
            out_specs=pl.BlockSpec((None, 2, 128), lambda b, h: (b, 0, 0)),
            scratch_shapes=[
                pltpu.VMEM((8, W), jnp.float32),         # acc_x  (per batch)
                pltpu.VMEM((8, W), jnp.float32),         # acc_y  (per batch)
                pltpu.VMEM((Cd, 1, W), jnp.float32),     # carried last depth row
                pltpu.VMEM((Ci, 1, W), jnp.float32),     # carried last image row
            ],
        ),
        compiler_params=pltpu.CompilerParams(
            dimension_semantics=("parallel", "arbitrary"),
            vmem_limit_bytes=vmem_limit),
        cost_estimate=cost,
    )(inv_depth_map, image)

    return (jnp.sum(partials[:, 0, 0]) * (1.0 / n_x)
            + jnp.sum(partials[:, 1, 0]) * (1.0 / n_y))


def reference_loss(d, im):
    """Pure-JAX reference matching the PyTorch module semantics."""
    gdx = jnp.abs(d[:, :, :, 1:] - d[:, :, :, :-1])
    gdy = jnp.abs(d[:, :, 1:, :] - d[:, :, :-1, :])
    gix = jnp.mean(jnp.abs(im[:, :, :, 1:] - im[:, :, :, :-1]),
                   axis=1, keepdims=True)
    giy = jnp.mean(jnp.abs(im[:, :, 1:, :] - im[:, :, :-1, :]),
                   axis=1, keepdims=True)
    return jnp.mean(gdx * jnp.exp(-gix)) + jnp.mean(gdy * jnp.exp(-giy))


if __name__ == "__main__":
    key = jax.random.PRNGKey(0)
    k1, k2, k3, k4 = jax.random.split(key, 4)

    # --- small f32 case: default tiling + forced H tiling (carry path) -------
    B, Cd, Ci, H, W = 2, 1, 3, 16, 16
    inv_depth = jax.random.uniform(k1, (B, Cd, H, W), dtype=jnp.float32)
    image = jax.random.uniform(k2, (B, Ci, H, W), dtype=jnp.float32)
    ref = reference_loss(inv_depth, image)

    loss = edge_aware_smoothness_loss(inv_depth, image)                     # 1 H tile
    loss_tiled = edge_aware_smoothness_loss(inv_depth, image, tile_h=8)     # 2 H tiles
    loss, loss_tiled = jax.block_until_ready((loss, loss_tiled))

    assert jnp.allclose(loss, ref, rtol=1e-5, atol=1e-6), (loss, ref)
    assert jnp.allclose(loss_tiled, ref, rtol=1e-5, atol=1e-6), (loss_tiled, ref)

    # --- bf16 inputs (recommended dtype): exercises dtype-aware TH (mult of 16)
    H2, W2 = 32, 128
    inv_depth_bf = jax.random.uniform(k3, (B, Cd, H2, W2),
                                      dtype=jnp.float32).astype(jnp.bfloat16)
    image_bf = jax.random.uniform(k4, (B, Ci, H2, W2),
                                  dtype=jnp.float32).astype(jnp.bfloat16)
    ref_bf = reference_loss(inv_depth_bf.astype(jnp.float32),
                            image_bf.astype(jnp.float32))
    loss_bf = edge_aware_smoothness_loss(inv_depth_bf, image_bf, tile_h=16)
    loss_bf = jax.block_until_ready(loss_bf)
    assert jnp.allclose(loss_bf, ref_bf, rtol=1e-4, atol=1e-5), (loss_bf, ref_bf)

    print("KERNEL_OK")
</pallas_src>

<mosaic_0001>
module attributes {stable_mosaic.version = 11 : i64} {
  func.func @_edge_loss_kernel(%arg0: i32, %arg1: i32, %arg2: memref<1x1x16x16xf32, #tpu.memory_space<vmem>>, %arg3: memref<1x3x16x16xf32, #tpu.memory_space<vmem>>, %arg4: memref<1x2x128xf32, #tpu.memory_space<vmem>>, %arg5: memref<8x16xf32, #tpu.memory_space<vmem>>, %arg6: memref<8x16xf32, #tpu.memory_space<vmem>>, %arg7: memref<1x1x16xf32, #tpu.memory_space<vmem>>, %arg8: memref<3x1x16xf32, #tpu.memory_space<vmem>>) attributes {dimension_semantics = [#tpu.dimension_semantics<parallel>, #tpu.dimension_semantics<arbitrary>], iteration_bounds = array<i64: 2, 1>, scalar_prefetch = 0 : i64, scratch_operands = 4 : i64, tpu.core_type = #tpu.core_type<tc>, window_params = [{transform_indices = @transform_0, window_bounds = array<i64: 1, 1, 16, 16>}, {transform_indices = @transform_1, window_bounds = array<i64: 1, 3, 16, 16>}, {transform_indices = @transform_2, window_bounds = array<i64: 1, 2, 128>}]} {
    %c0_i32 = arith.constant 0 : i32
    %0 = arith.cmpi eq, %arg1, %c0_i32 : i32
    %1 = arith.extui %0 : i1 to i32
    %c0_i32_0 = arith.constant 0 : i32
    %2 = arith.cmpi ne, %1, %c0_i32_0 : i32
    scf.if %2 {
      %cst_40 = arith.constant 0.000000e+00 : f32
      %65 = vector.broadcast %cst_40 : f32 to vector<8x16xf32>
      %c0_41 = arith.constant 0 : index
      %c0_42 = arith.constant 0 : index
      %66 = vector.load %arg5[%c0_41, %c0_42] : memref<8x16xf32, #tpu.memory_space<vmem>>, vector<8x16xf32>
      tpu.vector_store %arg5[%c0_41, %c0_42], %65 {strides = array<i32>} : memref<8x16xf32, #tpu.memory_space<vmem>>, vector<8x16xf32>,
      %cst_43 = arith.constant 0.000000e+00 : f32
      %67 = vector.broadcast %cst_43 : f32 to vector<8x16xf32>
      %c0_44 = arith.constant 0 : index
      %c0_45 = arith.constant 0 : index
      %68 = vector.load %arg6[%c0_44, %c0_45] : memref<8x16xf32, #tpu.memory_space<vmem>>, vector<8x16xf32>
      tpu.vector_store %arg6[%c0_44, %c0_45], %67 {strides = array<i32>} : memref<8x16xf32, #tpu.memory_space<vmem>>, vector<8x16xf32>,
    } else {
    }
    %c0 = arith.constant 0 : index
    %c0_1 = arith.constant 0 : index
    %c0_2 = arith.constant 0 : index
    %c0_3 = arith.constant 0 : index
    %3 = vector.load %arg2[%c0, %c0_1, %c0_2, %c0_3] : memref<1x1x16x16xf32, #tpu.memory_space<vmem>>, vector<1x1x16x16xf32>
    %4 = vector.shape_cast %3 : vector<1x1x16x16xf32> to vector<1x16x16xf32>
    %c0_4 = arith.constant 0 : index
    %c0_5 = arith.constant 0 : index
    %c0_6 = arith.constant 0 : index
    %c0_7 = arith.constant 0 : index
    %5 = vector.load %arg3[%c0_4, %c0_5, %c0_6, %c0_7] : memref<1x3x16x16xf32, #tpu.memory_space<vmem>>, vector<1x3x16x16xf32>
    %6 = vector.shape_cast %5 : vector<1x3x16x16xf32> to vector<3x16x16xf32>
    %c1_i32 = arith.constant 1 : i32
    %7 = tpu.dynamic_rotate %4 by %c1_i32 dim 2 : vector<1x16x16xf32>, i32 -> vector<1x16x16xf32>
    %c1_i32_8 = arith.constant 1 : i32
    %8 = tpu.dynamic_rotate %6 by %c1_i32_8 dim 2 : vector<3x16x16xf32>, i32 -> vector<3x16x16xf32>
    %9 = tpu.iota {dimensions = array<i32: 2>} : vector<1x16x16xi32>
    %c0_i32_9 = arith.constant 0 : i32
    %10 = vector.broadcast %c0_i32_9 : i32 to vector<1x16x16xi32>
    %11 = arith.cmpi ne, %9, %10 : vector<1x16x16xi32>
    %12 = arith.subf %4, %7 : vector<1x16x16xf32>
    %13 = math.absf %12 : vector<1x16x16xf32>
    %cst = arith.constant 0.000000e+00 : f32
    %14 = vector.broadcast %cst : f32 to vector<1x16x16xf32>
    %15 = arith.select %11, %13, %14 : vector<1x16x16xi1>, vector<1x16x16xf32>
    %16 = arith.subf %6, %8 : vector<3x16x16xf32>
    %17 = math.absf %16 : vector<3x16x16xf32>
    %cst_10 = arith.constant dense<0.000000e+00> : vector<16x16xf32>
    %18 = vector.multi_reduction <add>, %17, %cst_10 [0] : vector<3x16x16xf32> to vector<16x16xf32>
    %cst_11 = arith.constant 0.333333343 : f32
    %19 = vector.broadcast %cst_11 : f32 to vector<16x16xf32>
    %20 = arith.mulf %18, %19 : vector<16x16xf32>
    %cst_12 = arith.constant 0.000000e+00 : f32
    %21 = vector.broadcast %cst_12 : f32 to vector<16x16xf32>
    %22 = arith.subf %21, %20 : vector<16x16xf32>
    %23 = math.exp %22 : vector<16x16xf32>
    %24 = vector.shape_cast %23 : vector<16x16xf32> to vector<1x16x16xf32>
    %25 = arith.mulf %15, %24 : vector<1x16x16xf32>
    %c1_i32_13 = arith.constant 1 : i32
    %26 = tpu.dynamic_rotate %4 by %c1_i32_13 dim 1 : vector<1x16x16xf32>, i32 -> vector<1x16x16xf32>
    %c1_i32_14 = arith.constant 1 : i32
    %27 = tpu.dynamic_rotate %6 by %c1_i32_14 dim 1 : vector<3x16x16xf32>, i32 -> vector<3x16x16xf32>
    %28 = tpu.iota {dimensions = array<i32: 1>} : vector<1x16x16xi32>
    %c0_i32_15 = arith.constant 0 : i32
    %29 = vector.broadcast %c0_i32_15 : i32 to vector<1x16x16xi32>
    %30 = arith.cmpi ne, %28, %29 : vector<1x16x16xi32>
    %31 = arith.subf %4, %26 : vector<1x16x16xf32>
    %32 = math.absf %31 : vector<1x16x16xf32>
    %cst_16 = arith.constant 0.000000e+00 : f32
    %33 = vector.broadcast %cst_16 : f32 to vector<1x16x16xf32>
    %34 = arith.select %30, %32, %33 : vector<1x16x16xi1>, vector<1x16x16xf32>
    %35 = arith.subf %6, %27 : vector<3x16x16xf32>
    %36 = math.absf %35 : vector<3x16x16xf32>
    %cst_17 = arith.constant dense<0.000000e+00> : vector<16x16xf32>
    %37 = vector.multi_reduction <add>, %36, %cst_17 [0] : vector<3x16x16xf32> to vector<16x16xf32>
    %cst_18 = arith.constant 0.333333343 : f32
    %38 = vector.broadcast %cst_18 : f32 to vector<16x16xf32>
    %39 = arith.mulf %37, %38 : vector<16x16xf32>
    %cst_19 = arith.constant 0.000000e+00 : f32
    %40 = vector.broadcast %cst_19 : f32 to vector<16x16xf32>
    %41 = arith.subf %40, %39 : vector<16x16xf32>
    %42 = math.exp %41 : vector<16x16xf32>
    %43 = vector.shape_cast %42 : vector<16x16xf32> to vector<1x16x16xf32>
    %44 = arith.mulf %34, %43 : vector<1x16x16xf32>
    %c0_20 = arith.constant 0 : index
    %c0_21 = arith.constant 0 : index
    %45 = vector.load %arg5[%c0_20, %c0_21] : memref<8x16xf32, #tpu.memory_space<vmem>>, vector<8x16xf32>
    %46 = vector.shape_cast %25 : vector<1x16x16xf32> to vector<2x8x16xf32>
    %cst_22 = arith.constant dense<0.000000e+00> : vector<8x16xf32>
    %47 = vector.multi_reduction <add>, %46, %cst_22 [0] : vector<2x8x16xf32> to vector<8x16xf32>
    %48 = arith.addf %45, %47 : vector<8x16xf32>
    %c0_23 = arith.constant 0 : index
    %c0_24 = arith.constant 0 : index
    %49 = vector.load %arg5[%c0_23, %c0_24] : memref<8x16xf32, #tpu.memory_space<vmem>>, vector<8x16xf32>
    tpu.vector_store %arg5[%c0_23, %c0_24], %48 {strides = array<i32>} : memref<8x16xf32, #tpu.memory_space<vmem>>, vector<8x16xf32>,
    %c0_25 = arith.constant 0 : index
    %c0_26 = arith.constant 0 : index
    %50 = vector.load %arg6[%c0_25, %c0_26] : memref<8x16xf32, #tpu.memory_space<vmem>>, vector<8x16xf32>
    %51 = vector.shape_cast %44 : vector<1x16x16xf32> to vector<2x8x16xf32>
    %cst_27 = arith.constant dense<0.000000e+00> : vector<8x16xf32>
    %52 = vector.multi_reduction <add>, %51, %cst_27 [0] : vector<2x8x16xf32> to vector<8x16xf32>
    %53 = arith.addf %50, %52 : vector<8x16xf32>
    %c0_28 = arith.constant 0 : index
    %c0_29 = arith.constant 0 : index
    %54 = vector.load %arg6[%c0_28, %c0_29] : memref<8x16xf32, #tpu.memory_space<vmem>>, vector<8x16xf32>
    tpu.vector_store %arg6[%c0_28, %c0_29], %53 {strides = array<i32>} : memref<8x16xf32, #tpu.memory_space<vmem>>, vector<8x16xf32>,
    %c0_i32_30 = arith.constant 0 : i32
    %55 = arith.cmpi sgt, %arg1, %c0_i32_30 : i32
    %56 = arith.extui %55 : i1 to i32
    %c0_i32_31 = arith.constant 0 : i32
    %57 = arith.cmpi ne, %56, %c0_i32_31 : i32
    scf.if %57 {
      %65 = vector.extract_strided_slice %4 {offsets = [0, 0, 0], sizes = [1, 1, 16], strides = [1, 1, 1]} : vector<1x16x16xf32> to vector<1x1x16xf32>
      %c0_40 = arith.constant 0 : index
      %c0_41 = arith.constant 0 : index
      %c0_42 = arith.constant 0 : index
      %66 = vector.load %arg7[%c0_40, %c0_41, %c0_42] : memref<1x1x16xf32, #tpu.memory_space<vmem>>, vector<1x1x16xf32>
      %67 = arith.subf %65, %66 : vector<1x1x16xf32>
      %68 = math.absf %67 : vector<1x1x16xf32>
      %cst_43 = arith.constant dense<0.000000e+00> : vector<1x16xf32>
      %69 = vector.multi_reduction <add>, %68, %cst_43 [0] : vector<1x1x16xf32> to vector<1x16xf32>
      %70 = vector.extract_strided_slice %6 {offsets = [0, 0, 0], sizes = [3, 1, 16], strides = [1, 1, 1]} : vector<3x16x16xf32> to vector<3x1x16xf32>
      %c0_44 = arith.constant 0 : index
      %c0_45 = arith.constant 0 : index
      %c0_46 = arith.constant 0 : index
      %71 = vector.load %arg8[%c0_44, %c0_45, %c0_46] : memref<3x1x16xf32, #tpu.memory_space<vmem>>, vector<3x1x16xf32>
      %72 = arith.subf %70, %71 : vector<3x1x16xf32>
      %73 = math.absf %72 : vector<3x1x16xf32>
      %cst_47 = arith.constant dense<0.000000e+00> : vector<1x16xf32>
      %74 = vector.multi_reduction <add>, %73, %cst_47 [0] : vector<3x1x16xf32> to vector<1x16xf32>
      %cst_48 = arith.constant 0.333333343 : f32
      %75 = vector.broadcast %cst_48 : f32 to vector<1x16xf32>
      %76 = arith.mulf %74, %75 : vector<1x16xf32>
      %c0_49 = arith.constant 0 : index
      %c0_50 = arith.constant 0 : index
      %77 = vector.load %arg6[%c0_49, %c0_50] : memref<8x16xf32, #tpu.memory_space<vmem>>, vector<1x16xf32>
      %cst_51 = arith.constant 0.000000e+00 : f32
      %78 = vector.broadcast %cst_51 : f32 to vector<1x16xf32>
      %79 = arith.subf %78, %76 : vector<1x16xf32>
      %80 = math.exp %79 : vector<1x16xf32>
      %81 = arith.mulf %69, %80 : vector<1x16xf32>
      %82 = arith.addf %77, %81 : vector<1x16xf32>
      %c0_52 = arith.constant 0 : index
      %c0_53 = arith.constant 0 : index
      %83 = vector.load %arg6[%c0_52, %c0_53] : memref<8x16xf32, #tpu.memory_space<vmem>>, vector<1x16xf32>
      tpu.vector_store %arg6[%c0_52, %c0_53], %82 {strides = array<i32>} : memref<8x16xf32, #tpu.memory_space<vmem>>, vector<1x16xf32>,
    } else {
    }
    %58 = vector.extract_strided_slice %4 {offsets = [0, 15, 0], sizes = [1, 1, 16], strides = [1, 1, 1]} : vector<1x16x16xf32> to vector<1x1x16xf32>
    %c0_32 = arith.constant 0 : index
    %c0_33 = arith.constant 0 : index
    %c0_34 = arith.constant 0 : index
    %59 = vector.load %arg7[%c0_32, %c0_33, %c0_34] : memref<1x1x16xf32, #tpu.memory_space<vmem>>, vector<1x1x16xf32>
    tpu.vector_store %arg7[%c0_32, %c0_33, %c0_34], %58 {strides = array<i32>} : memref<1x1x16xf32, #tpu.memory_space<vmem>>, vector<1x1x16xf32>,
    %60 = vector.extract_strided_slice %6 {offsets = [0, 15, 0], sizes = [3, 1, 16], strides = [1, 1, 1]} : vector<3x16x16xf32> to vector<3x1x16xf32>
    %c0_35 = arith.constant 0 : index
    %c0_36 = arith.constant 0 : index
    %c0_37 = arith.constant 0 : index
    %61 = vector.load %arg8[%c0_35, %c0_36, %c0_37] : memref<3x1x16xf32, #tpu.memory_space<vmem>>, vector<3x1x16xf32>
    tpu.vector_store %arg8[%c0_35, %c0_36, %c0_37], %60 {strides = array<i32>} : memref<3x1x16xf32, #tpu.memory_space<vmem>>, vector<3x1x16xf32>,
    %c0_i32_38 = arith.constant 0 : i32
    %62 = arith.cmpi eq, %arg1, %c0_i32_38 : i32
    %63 = arith.extui %62 : i1 to i32
    %c0_i32_39 = arith.constant 0 : i32
    %64 = arith.cmpi ne, %63, %c0_i32_39 : i32
    scf.if %64 {
      %c0_40 = arith.constant 0 : index
      %c0_41 = arith.constant 0 : index
      %65 = vector.load %arg5[%c0_40, %c0_41] : memref<8x16xf32, #tpu.memory_space<vmem>>, vector<8x16xf32>
      %66 = vector.shape_cast %65 : vector<8x16xf32> to vector<1x8x16xf32>
      %cst_42 = arith.constant dense<0.000000e+00> : vector<1xf32>
      %67 = vector.multi_reduction <add>, %66, %cst_42 [1, 2] : vector<1x8x16xf32> to vector<1xf32>
      %68 = vector.shape_cast %67 : vector<1xf32> to vector<1x1x1xf32>
      %69 = vector.extract %68[0, 0, 0] : f32 from vector<1x1x1xf32>
      %c0_43 = arith.constant 0 : index
      %c0_44 = arith.constant 0 : index
      %70 = vector.load %arg6[%c0_43, %c0_44] : memref<8x16xf32, #tpu.memory_space<vmem>>, vector<8x16xf32>
      %71 = vector.shape_cast %70 : vector<8x16xf32> to vector<1x8x16xf32>
      %cst_45 = arith.constant dense<0.000000e+00> : vector<1xf32>
      %72 = vector.multi_reduction <add>, %71, %cst_45 [1, 2] : vector<1x8x16xf32> to vector<1xf32>
      %73 = vector.shape_cast %72 : vector<1xf32> to vector<1x1x1xf32>
      %74 = vector.extract %73[0, 0, 0] : f32 from vector<1x1x1xf32>
      %75 = tpu.iota {dimensions = array<i32: 0>} : vector<2x128xi32>
      %c0_i32_46 = arith.constant 0 : i32
      %76 = vector.broadcast %c0_i32_46 : i32 to vector<2x128xi32>
      %77 = arith.cmpi eq, %75, %76 : vector<2x128xi32>
      %78 = vector.broadcast %69 : f32 to vector<2x128xf32>
      %79 = vector.broadcast %74 : f32 to vector<2x128xf32>
      %80 = arith.select %77, %78, %79 : vector<2x128xi1>, vector<2x128xf32>
      %c0_47 = arith.constant 0 : index
      %c0_48 = arith.constant 0 : index
      %c0_49 = arith.constant 0 : index
      %81 = vector.load %arg4[%c0_47, %c0_48, %c0_49] : memref<1x2x128xf32, #tpu.memory_space<vmem>>, vector<1x2x128xf32>
      %82 = vector.shape_cast %81 : vector<1x2x128xf32> to vector<2x128xf32>
      %83 = vector.shape_cast %80 : vector<2x128xf32> to vector<1x2x128xf32>
      tpu.vector_store %arg4[%c0_47, %c0_48, %c0_49], %83 {strides = array<i32>} : memref<1x2x128xf32, #tpu.memory_space<vmem>>, vector<1x2x128xf32>,
    } else {
    }
    return
  }
  func.func @transform_0(%arg0: i32, %arg1: i32) -> (i32, i32, i32, i32) {
    %c0_i32 = arith.constant 0 : i32
    %c0_i32_0 = arith.constant 0 : i32
    %c0_i32_1 = arith.constant 0 : i32
    return %arg0, %c0_i32, %arg1, %c0_i32_0 : i32, i32, i32, i32
  }
  func.func @transform_1(%arg0: i32, %arg1: i32) -> (i32, i32, i32, i32) {
    %c0_i32 = arith.constant 0 : i32
    %c0_i32_0 = arith.constant 0 : i32
    %c0_i32_1 = arith.constant 0 : i32
    return %arg0, %c0_i32, %arg1, %c0_i32_0 : i32, i32, i32, i32
  }
  func.func @transform_2(%arg0: i32, %arg1: i32) -> (i32, i32, i32) {
    %c0_i32 = arith.constant 0 : i32
    %c0_i32_0 = arith.constant 0 : i32
    %c0_i32_1 = arith.constant 0 : i32
    return %arg0, %c0_i32, %c0_i32_0 : i32, i32, i32
  }
}

</mosaic_0001>

<bundles_post_ra>
// kernel: tpu_custom_call.1
= control target key start
LH: loop header
LB: loop body
LE: loop exit
PB: predicated region body
PF: predicated region fallthrough
CT: control target
= control target key end

     0   :  { %7 = vsyncpa [#allocation7], 0  ;;  %s1184_s0 = inlined_call_operand.hbm [shape: f32[2,1,16,16], index: 0, kind: input, shape index: {}]   ;;  %s1185_s1 = inlined_call_operand.hbm [shape: f32[2,3,16,16], index: 1, kind: input, shape index: {}]   ;;  %s1186_s2 = inlined_call_operand.hbm [shape: f32[2,2,128], index: 2, kind: output, shape index: {}]  }
   0x1   :  { %9 = vsyncpa [#allocation7 + $0x1], 0 }
   0x2   :  { %10 = vsyncpa [#allocation10], 0 }
   0x3   :  { %12 = vsyncpa [#allocation10 + $0x1], 0 }
   0x4   :  { %13 = vsyncpa [#allocation8], 0 }
   0x5   :  { %15 = vsyncpa [#allocation8 + $0x1], 0  ;;  %s898_s9 = smov 0   ;;  %s900_s10 = smov 0  }
   0x6   :  { %s902_s11 = smov 0   ;;  %s904_s12 = smov 0  }
   0x7   :  { %s906_s13 = smov 0   ;;  %s908_s14 = smov 0  }
   0x8 LB: > { %s627_s15 = sadd.s32 4294967295, %s876_s14   ;;  %s628_s16 = sadd.s32 4294967294, %s876_s14   ;;  %s876_s14 = sphi %s908_s14, %s21_s14   ;;  %s872_s13 = sphi %s906_s13, %s1196_s13   ;;  %s868_s12 = sphi %s904_s12, %s1195_s12   ;;  %s864_s11 = sphi %s902_s11, %s1194_s11   ;;  %s860_s10 = sphi %s900_s10, %s1193_s10   ;;  %s856_s9 = sphi %s898_s9, %s1192_s9  }
   0x9   : > { %s33_s17 = sadd.s32 1, %s872_s13  ;;  %s42_s18 = sadd.s32 1, %s864_s11 }
   0xa   : > { %p35_p0 = scmp.ge.s32.totalorder %s33_s17, 2  ;;  %p49_p1 = scmp.ne.s32.totalorder %s864_s11, %s860_s10 }
   0xb   : > { %p50_p2 = scmp.eq.s32.totalorder %s876_s14, 0  ;;  %p55_p3 = scmp.ne.s32.totalorder %s860_s10, %s856_s9 }
   0xc   : > { %s1198_s17 = smov (%p35_p0, %s33_s17), 0  ;;  %p56_p5 = scmp.eq.s32.totalorder %s627_s15, 0 }
   0xd   : > { %p939_p4 = por %p50_p2, %p49_p1  ;;  %s37_s20 = ssub.s32 %s872_s13, %s1198_s17 }
   0xe   : > { %p107_p6 = scmp.eq.s32.totalorder %s627_s15, 1  ;;  %p40_p7 = scmp.eq.s32.totalorder %s37_s20, 0 }
   0xf   : > { %p945_p8 = por %p56_p5, %p55_p3  ;;  %p113_p10 = scmp.eq.s32.totalorder %s628_s16, 1 }
  0x10   : > { %p949_p9 = por %p107_p6, %p49_p1  ;;  %p630_p12 = scmp.ge.s32.totalorder %s876_s14, 2 }
  0x11   : > { %s954_s23 = scalar_select %p40_p7, %s864_s11, %s42_s18  }
  0x12   : > { %p956_p11 = por %p113_p10, %p55_p3  ;;  %p667_p13 = scmp.lt.s32.totalorder %s876_s14, 2 }
  0x13   : > { %s963_s25 = sand.u32 1, %s864_s11   ;;  %s642_s27 = sshll.u32 %s872_s13, 4 }
  0x14   : > { %s631_s26 = sshll.u32 %s963_s25, 4  ;;  %s144_s30 = scalar_lea.hbm %s1184_s0, %s642_s27 }
  0x15   : > { %s137_s3 = scalar_lea.vmem [#allocation6], %s631_s26  ;;  %s145_s5 = sshll.u32 %s144_s30, 4  ;;  %s146_s5 = int_to_ptr.hbm [resolvable:$true] %s145_s5 }
  0x16   : > { %s147_s4 = sshll.u32 %s137_s3, 4  ;;  %p972_p0 = pnand %p667_p13, %p939_p4  ;;  %s148_s4 = int_to_ptr.vmem [resolvable:$true] %s147_s4 }
  0x17   : > { %p635_p1 = scmp.ge.s32.totalorder %s876_s14, 1  ;;  %s134_s7 = scalar_lea.sflag [#allocation7], %s963_s25 }
  0x18   : > { %s878_s8 = smov 128   ;;  %s879_s15 = smov 8  }
  0x19   : > { %659 = dma.hbm_to_vmem [thread:$0]  (!%p972_p0), %s146_s5, 256, %s148_s4, %s134_s7, %s878_s8, %s878_s8, %s879_s15  }
  0x1a   : > { %p179_p2 = scmp.lt.s32.totalorder %s876_s14, 3  ;;  %s643_s16 = smul.u32 48, %s963_s25 }
  0x1b   : > { %s644_s18 = smul.u32 48, %s872_s13  ;;  %s158_s30 = scalar_lea.sflag [#allocation10], %s963_s25 }
  0x1c   : > { %p180_p3 = pnand %p635_p1, %p179_p2  ;;  %s161_s27 = scalar_lea.vmem [#allocation9], %s643_s16 }
  0x1d   : > { %s168_s19 = scalar_lea.hbm %s1185_s1, %s644_s18  ;;  %s171_s28 = sshll.u32 %s161_s27, 4  ;;  %s172_s28 = int_to_ptr.vmem [resolvable:$true] %s171_s28 }
  0x1e   : > { %s169_s29 = sshll.u32 %s168_s19, 4  ;;  %183 = sbr.rel (%p180_p3) target bundleno = 616 (0x268), region = 28  ;;  %s170_s29 = int_to_ptr.hbm [resolvable:$true] %s169_s29 }
  0x1f   : > { %662 = dma.hbm_to_vmem [thread:$0]  (!%p972_p0), %s170_s29, 768, %s172_s28, %s158_s30, %s878_s8, %s878_s8, %s879_s15  }
  0x20   : > { %s990_s3 = sand.u32 (!%p180_p3), 1, %s860_s10  }
  0x21   : > { %s636_s4 = sshll.u32 (!%p180_p3), %s990_s3, 4  ;;  %s186_s5 = scalar_lea.sflag (!%p180_p3), [#allocation7], %s990_s3 }
  0x22   : > { %s189_s7 = scalar_lea.vmem (!%p180_p3), [#allocation6], %s636_s4 }
  0x23   : > { %843 = dma.done.wait (%p945_p8), %s186_s5, 256  }
  0x24   : > { %845 = vsyncadd (%p945_p8), %s186_s5, 4294967040  ;;  %s645_s25 = smul.u32 48, %s990_s3  ;;  %s196_s6 = scalar_lea.sflag [#allocation10], %s990_s3 }
  0x26   : > { %s199_s8 = scalar_lea.vmem [#allocation9], %s645_s25 }
  0x27   : > { %847 = dma.done.wait (%p945_p8), %s196_s6, 768  }
  0x28   : > { %849 = vsyncadd (%p945_p8), %s196_s6, 4294966528  ;;  %v1004_v0 = vld [vmem:[%s199_s8 + $0x10] sm:$0xff]  ;;  %v1006_v1 = vld [vmem:[%s199_s8] sm:$0xff]  ;;  %s880_s15 = smov 16   ;;  %vm243_vm0 = vcmask 1047680   ;;  %s881_s21 = smov 113   ;;  %v292_v40 = vlaneseq }
  0x29   : > { %v1008_v2 = vld [vmem:[%s199_s8 + $0x8] sm:$0xff]  ;;  %262 = vrot.lane.b32.xlu1 %v1004_v0, %s880_s15  ;;  %256 = vrot.lane.b32.xlu0 %v1006_v1, %s880_s15  ;;  %v1014_v3 = vld [vmem:[%s199_s8 + $0x20] sm:$0xff]  ;;  %v374_v41 = vrot.slane %v1004_v0, 7  ;;  %v373_v42 = vrot.slane %v1006_v1, 7  ;;  %vm232_vm2 = vcmask 130048   ;;  %s637_s16 = sshll.u32 %s990_s3, 1 }
  0x2a   : > { %268 = vrot.lane.b32.xlu2 %v1014_v3, %s880_s15  ;;  %v1018_v4 = vld [vmem:[%s199_s8 + $0x18] sm:$0xff]  ;;  %v1020_v5 = vld [vmem:[%s199_s8 + $0x28] sm:$0xff]  ;;  %v1030_v7 = vld [vmem:[%s189_s7] sm:$0xff]  ;;  %v376_v43 = vrot.slane %v1008_v2, 7  ;;  %v1081_v45 = vshrl.u32 %v292_v40, 7  ;;  %v375_v46 = vrot.slane %v1014_v3, 7 }
  0x2b   : > { %v1022_v6 = vld [vmem:[%s189_s7 + $0x8] sm:$0xff]  ;;  %v377_v44 = vrot.slane %v1018_v4, 7  ;;  %v378_v47 = vrot.slane %v1020_v5, 7  ;;  %s639_s18 = sshll.u32 %s868_s12, 1  ;;  %s225_s27 = scalar_lea.vmem [#allocation11], %s637_s16 }
  0x2c   : > { %vm370_vm1 = vcmp.lt.s32.totalorder %v1081_v45, 1  ;;  %vm386_vm3 = vcmp.ne.s32.totalorder %v1081_v45, 0  ;;  %s515_s19 = scalar_lea.hbm %s1186_s2, %s639_s18  ;;  %s517_s28 = sshll.u32 %s225_s27, 4  ;;  %vm499_vm5 = vcmp.eq.s32.totalorder %v1081_v45, 0  ;;  %s518_s28 = int_to_ptr.vmem [resolvable:$true] %s517_s28 }
  0x2d   : > { %v379_v48 = vsel %vm370_vm1, %v373_v42, %v376_v43  ;;  %v380_v49 = vsel %vm370_vm1, %v374_v41, %v377_v44  ;;  %v382_v50 = vsel %vm370_vm1, %v376_v43, %v373_v42  ;;  %v383_v51 = vsel %vm370_vm1, %v377_v44, %v374_v41  ;;  %s519_s29 = sshll.u32 %s515_s19, 4  ;;  %s505_s5 = scalar_lea.sflag [#allocation8], %s990_s3  ;;  %s520_s29 = int_to_ptr.hbm [resolvable:$true] %s519_s29 }
  0x2e   : > { %v394_v52 = vsub.f32 %v1006_v1, %v382_v50  ;;  %v395_v53 = vsub.f32 %v1008_v2, %v379_v48  ;;  %v396_v54 = vsub.f32 %v1004_v0, %v383_v51  ;;  %v397_v55 = vsub.f32 %v1018_v4, %v380_v49  ;;  %s804_s12 = sshra.s32 %s520_s29, 4  ;;  %s810_s8 = scalar_lea.hbm %s1186_s2, 4  ;;  %s805_s12 = int_to_ptr.hbm [resolvable:$true] %s804_s12 }
  0x2f   : > { %v381_v56 = vsel %vm370_vm1, %v375_v46, %v378_v47  ;;  %v384_v57 = vsel %vm370_vm1, %v378_v47, %v375_v46  ;;  %s806_s7 = scalar_lea.hbm %s805_s12, 2  ;;  %p811_p7 = scmp.lt.s32.totalorder %s805_s12, %s1186_s2 }
  0x30   : > { %v398_v58 = vsub.f32 %v1014_v3, %v384_v57  ;;  %v399_v59 = vsub.f32 %v1020_v5, %v381_v56  ;;  %v400_v60 = vand.u32 2147483647, %v394_v52  ;;  %v401_v61 = vand.u32 2147483647, %v395_v53  ;;  %p807_p4 = scmp.ne.s32.totalorder %s805_s12, %s806_s7  ;;  %p812_p8 = scmp.lt.s32.totalorder %s810_s8, %s806_s7 }
  0x31   : > { %259 = vrot.lane.b32.xlu0 %v1008_v2, %s880_s15  ;;  %265 = vrot.lane.b32.xlu1 %v1018_v4, %s880_s15  ;;  %v402_v62 = vand.u32 2147483647, %v396_v54  ;;  %v403_v63 = vand.u32 2147483647, %v397_v55 }
  0x32   : > { %271 = vrot.lane.b32.xlu2 %v1020_v5, %s880_s15  ;;  %p808_p5 = pnand %p807_p4, %p949_p9  ;;  %p813_p10 = por %p812_p8, %p811_p7 }
  0x34   : > { %p809_p6 = pneg %p808_p5 }
  0x36   : > { %p814_p13 = pnand %p813_p10, %p809_p6 }
  0x39   : > { %244 = vrot.lane.b32.xlu0 %v1030_v7, %s880_s15  ;;  %247 = vrot.lane.b32.xlu1 %v1022_v6, %s880_s15 }
  0x84   : > { %v269_v8 = vpop.permute.xlu2 %268 }
  0x85   : > { %v270_v20 = vsel %vm243_vm0, %v269_v8, %v1014_v3  ;;  %v404_v8 = vand.u32 2147483647, %v398_v58 }
  0x8c   : > { %v272_v13 = vpop.permute.xlu2 %271 }
  0x8d   : > { %v273_v14 = vsel %vm243_vm0, %v272_v13, %v1020_v5  ;;  %v412_v13 = vsel %vm232_vm2, %v403_v63, 0.0 }
  0x9b   : > { %v263_v9 = vpop.permute.xlu1 %262  ;;  %v257_v10 = vpop.permute.xlu0 %256 }
  0x9c   : > { %v264_v11 = vsel %vm243_vm0, %v263_v9, %v1004_v0  ;;  %v258_v12 = vsel %vm243_vm0, %v257_v10, %v1006_v1  ;;  %v405_v9 = vand.u32 2147483647, %v399_v59  ;;  %v406_v10 = vsel %vm232_vm2, %v400_v60, 0.0 }
  0x9d   : > { %278 = vrot.lane.b32.xlu1 %v264_v11, %s880_s15  ;;  %274 = vrot.lane.b32.xlu2 %v258_v12, %s880_s15  ;;  %v411_v11 = vsel %vm232_vm2, %v401_v61, 0.0  ;;  %v407_v12 = vsel %vm232_vm2, %v402_v62, 0.0 }
  0xa3   : > { %v260_v15 = vpop.permute.xlu0 %259  ;;  %v266_v16 = vpop.permute.xlu1 %265 }
  0xa4   : > { %v261_v17 = vsel %vm243_vm0, %v260_v15, %v1008_v2  ;;  %v267_v18 = vsel %vm243_vm0, %v266_v16, %v1018_v4  ;;  %v409_v15 = vsel %vm232_vm2, %v404_v8, 0.0  ;;  %v413_v16 = vadd.f32 %v412_v13, %v411_v11 }
  0xa5   : > { %284 = vrot.lane.b32.xlu1 %v273_v14, %s880_s15  ;;  %276 = vrot.lane.b32.xlu0 %v261_v17, %s880_s15  ;;  %v408_v14 = vadd.f32 %v407_v12, %v406_v10  ;;  %v414_v17 = vsel %vm232_vm2, %v405_v9, 0.0 }
  0xa6   : > { %280 = vrot.lane.b32.xlu2 %v267_v18, %s880_s15 }
  0xa7   : > { %v410_v18 = vadd.f32 %v409_v15, %v408_v14 }
  0xab   : > { %v245_v19 = vpop.permute.xlu0 %244  ;;  %v248_v22 = vpop.permute.xlu1 %247 }
  0xac   : > { %v246_v21 = vsel %vm243_vm0, %v245_v19, %v1030_v7  ;;  %v249_v23 = vsel %vm243_vm0, %v248_v22, %v1022_v6  ;;  %v415_v19 = vadd.f32 %v414_v17, %v413_v16  ;;  %v366_v22 = vrot.slane %v1030_v7, 7 }
  0xad   : > { %282 = vrot.lane.b32.xlu0 %v270_v20, %s880_s15  ;;  %v416_v20 = vmul.f32 0.33333334, %v410_v18 }
  0xae   : > { %250 = vrot.lane.b32.xlu2 %v246_v21, %s880_s15  ;;  %v417_v21 = vmul.f32 0.33333334, %v415_v19 }
  0xb5   : > { %252 = vrot.lane.b32.xlu0 %v249_v23, %s880_s15  ;;  %v418_v23 = vsub.f32 0.0, %v416_v20 }
  0xf7   : > { %v275_v24 = vpop.permute.xlu2 %274 }
  0xf8   : > { %v286_v25 = vsel %vm243_vm0, %v275_v24, %v1006_v1  ;;  %v419_v24 = vsub.f32 0.0, %v417_v21 }
  0xf9   : > { %315 = vrot.lane.b32.xlu1 %v286_v25, %s881_s21  ;;  %v367_v25 = vrot.slane %v1022_v6, 7 }
 0x100   : > { %v281_v26 = vpop.permute.xlu2 %280 }
 0x101   : > { %v289_v27 = vsel %vm243_vm0, %v281_v26, %v1018_v4  ;;  %v420_v26 = vmul.f32 1.442695, %v418_v23  ;;  %v293_v23 = vand.u32 127, %v292_v40 }
 0x102   : > { %321 = vrot.lane.b32.xlu1 %v289_v27, %s881_s21  ;;  %v422_v27 = vmul.f32 1.442695, %v419_v24 }
 0x103   : > { %722 = vpow2.f32 %v420_v26  ;;  %vm294_vm4 = vcmp.ne.s32.totalorder %v293_v23, 0 }
 0x104   : > { %724 = vpow2.f32 %v422_v27 }
 0x108   : > { %v251_v28 = vpop.permute.xlu2 %250 }
 0x109   : > { %v254_v29 = vsel %vm243_vm0, %v251_v28, %v1030_v7  ;;  %v372_v28 = vsel %vm370_vm1, %v367_v25, %v366_v22 }
 0x10a   : > { %297 = vrot.lane.b32.xlu1 %v254_v29, %s881_s21 }
 0x10f   : > { %v279_v30 = vpop.permute.xlu1 %278 }
 0x110   : > { %v288_v31 = vsel %vm243_vm0, %v279_v30, %v1004_v0  ;;  %v371_v30 = vsel %vm370_vm1, %v366_v22, %v367_v25 }
 0x111   : > { %319 = vrot.lane.b32.xlu0 %v288_v31, %s881_s21  ;;  %v388_v31 = vsub.f32 %v1030_v7, %v372_v28 }
 0x117   : > { %v285_v32 = vpop.permute.xlu1 %284  ;;  %v277_v33 = vpop.permute.xlu0 %276 }
 0x118   : > { %v291_v34 = vsel %vm243_vm0, %v285_v32, %v1020_v5  ;;  %v287_v35 = vsel %vm243_vm0, %v277_v33, %v1008_v2  ;;  %v389_v32 = vsub.f32 %v1022_v6, %v371_v30 }
 0x119   : > { %325 = vrot.lane.b32.xlu0 %v291_v34, %s881_s21  ;;  %317 = vrot.lane.b32.xlu2 %v287_v35, %s881_s21  ;;  %v882_v34 = vmov 0.0   ;;  %v390_v35 = vand.u32 2147483647, %v388_v31 }
 0x11a   : > { %234 = vst.msk [vmem:[#allocation3] sm:$0xff] %vm232_vm2, %v882_v34 }
 0x11b   : > { %233 = vst.msk [vmem:[#allocation2] sm:$0xff] %vm232_vm2, %v882_v34 }
 0x11f   : > { %v283_v36 = vpop.permute.xlu0 %282 }
 0x120   : > { %v290_v37 = vsel %vm243_vm0, %v283_v36, %v1014_v3  ;;  %v391_v36 = vand.u32 2147483647, %v389_v32 }
 0x121   : > { %323 = vrot.lane.b32.xlu2 %v290_v37, %s881_s21  ;;  %v392_v37 = vsel %vm386_vm3, %v390_v35, 0.0  ;;  %v432_v44 = vld [vmem:[#allocation3] sm:$0xff] }
 0x127   : > { %v253_v38 = vpop.permute.xlu0 %252 }
 0x128   : > { %v255_v39 = vsel %vm243_vm0, %v253_v38, %v1022_v6  ;;  %v723_v38 = vpop.eup %722 }
 0x129   : > { %299 = vrot.lane.b32.xlu2 %v255_v39, %s881_s21  ;;  %v725_v39 = vpop.eup %724  ;;  %v424_v41 = vmul.f32 %v723_v38, %v392_v37 }
 0x12a   : > { %v425_v42 = vmul.f32 %v725_v39, %v391_v36 }
 0x12b   : > { %v433_v43 = vsel %vm232_vm2, %v424_v41, 0.0 }
 0x12c   : > { %v434_v46 = vsel %vm232_vm2, %v425_v42, 0.0 }
 0x12d   : > { %v435_v48 = vadd.f32 %v434_v46, %v433_v43 }
 0x12f   : > { %v436_v51 = vadd.f32 %v435_v48, %v432_v44 }
 0x131   : > { %437 = vst.msk [vmem:[#allocation3] sm:$0xff] %vm232_vm2, %v436_v51 }
 0x138   : > { %v488_v8 = vld [vmem:[#allocation3] sm:$0xff] }
 0x16b   : > { %v316_v33 = vpop.permute.xlu1 %315 }
 0x16c   : > { %v333_v49 = vsub.f32 %v1006_v1, %v316_v33 }
 0x16e   : > { %v339_v55 = vand.u32 2147483647, %v333_v49 }
 0x170   : > { %v346_v61 = vsel %vm232_vm2, %v339_v55, 0.0 }
 0x173   : > { %v318_v29 = vpop.permute.xlu2 %317 }
 0x174   : > { %v322_v50 = vpop.permute.xlu1 %321  ;;  %v334_v54 = vsub.f32 %v1008_v2, %v318_v29  ;;  %v489_v2 = vsel %vm232_vm2, %v488_v8, 0.0 }
 0x175   : > { %v336_v56 = vsub.f32 %v1018_v4, %v322_v50  ;;  %490 = vadd.xlane.f32.xlu1 %v489_v2 }
 0x176   : > { %v340_v60 = vand.u32 2147483647, %v334_v54 }
 0x177   : > { %v342_v1 = vand.u32 2147483647, %v336_v56 }
 0x178   : > { %v351_v4 = vsel %vm232_vm2, %v340_v60, 0.0 }
 0x17b   : > { %v324_v47 = vpop.permute.xlu2 %323 }
 0x17c   : > { %v337_v52 = vsub.f32 %v1014_v3, %v324_v47  ;;  %v298_v17 = vpop.permute.xlu1 %297 }
 0x17d   : > { %v303_v22 = vsub.f32 %v1030_v7, %v298_v17  ;;  %v426_v7 = vld [vmem:[#allocation2] sm:$0xff] }
 0x17e   : > { %v343_v58 = vand.u32 2147483647, %v337_v52 }
 0x17f   : > { %v305_v26 = vand.u32 2147483647, %v303_v22 }
 0x180   : > { %v349_v3 = vsel %vm232_vm2, %v343_v58, 0.0 }
 0x181   : > { %v307_v29 = vsel %vm294_vm4, %v305_v26, 0.0 }
 0x183   : > { %v320_v53 = vpop.permute.xlu0 %319  ;;  %v300_v20 = vpop.permute.xlu2 %299 }
 0x184   : > { %v335_v57 = vsub.f32 %v1004_v0, %v320_v53  ;;  %v352_v0 = vsel %vm232_vm2, %v342_v1, 0.0 }
 0x185   : > { %v353_v14 = vadd.f32 %v352_v0, %v351_v4 }
 0x186   : > { %v341_v59 = vand.u32 2147483647, %v335_v57 }
 0x188   : > { %v347_v62 = vsel %vm232_vm2, %v341_v59, 0.0 }
 0x189   : > { %v348_v63 = vadd.f32 %v347_v62, %v346_v61 }
 0x18b   : > { %v350_v9 = vadd.f32 %v349_v3, %v348_v63  ;;  %v326_v10 = vpop.permute.xlu0 %325 }
 0x18c   : > { %v338_v11 = vsub.f32 %v1020_v5, %v326_v10  ;;  %v304_v5 = vsub.f32 %v1022_v6, %v300_v20 }
 0x18d   : > { %v356_v12 = vmul.f32 0.33333334, %v350_v9 }
 0x18e   : > { %v344_v13 = vand.u32 2147483647, %v338_v11  ;;  %v306_v27 = vand.u32 2147483647, %v304_v5 }
 0x18f   : > { %v358_v15 = vsub.f32 0.0, %v356_v12 }
 0x190   : > { %v354_v16 = vsel %vm232_vm2, %v344_v13, 0.0  ;;  %v308_v30 = vsel %vm294_vm4, %v306_v27, 0.0 }
 0x191   : > { %v360_v18 = vmul.f32 1.442695, %v358_v15  ;;  %v355_v19 = vadd.f32 %v354_v16, %v353_v14 }
 0x193   : > { %v357_v21 = vmul.f32 0.33333334, %v355_v19  ;;  %726 = vpow2.f32 %v360_v18 }
 0x195   : > { %v359_v24 = vsub.f32 0.0, %v357_v21 }
 0x197   : > { %v362_v25 = vmul.f32 1.442695, %v359_v24 }
 0x199   : > { %728 = vpow2.f32 %v362_v25  ;;  %v727_v28 = vpop.eup %726 }
 0x19a   : > { %v364_v31 = vmul.f32 %v727_v28, %v307_v29 }
 0x19c   : > { %v427_v34 = vsel %vm232_vm2, %v364_v31, 0.0 }
 0x19f   : > { %v729_v32 = vpop.eup %728 }
 0x1a0   : > { %v365_v33 = vmul.f32 %v729_v32, %v308_v30 }
 0x1a2   : > { %v428_v40 = vsel %vm232_vm2, %v365_v33, 0.0 }
 0x1a3   : > { %v429_v35 = vadd.f32 %v428_v40, %v427_v34 }
 0x1a5   : > { %v430_v36 = vadd.f32 %v429_v35, %v426_v7 }
 0x1a7   : > { %431 = vst.msk [vmem:[#allocation2] sm:$0xff] %vm232_vm2, %v430_v36 }
 0x1ae   : > { %v477_v6 = vld [vmem:[#allocation2] sm:$0xff] }
 0x1af   : > { %v478_v37 = vsel %vm232_vm2, %v477_v6, 0.0 }
 0x1b0   : > { %479 = vadd.xlane.f32.xlu0 %v478_v37 }
 0x1e8   : > { %v491_v38 = vpop.xlane.xlu1 %490 }
 0x1e9   : > { %v492_v39 = vrot.slane %v491_v38, 4 }
 0x1eb   : > { %v493_v41 = vadd.f32 %v492_v39, %v491_v38 }
 0x1ed   : > { %v494_v42 = vrot.slane %v493_v41, 2 }
 0x1ef   : > { %v495_v47 = vadd.f32 %v494_v42, %v493_v41 }
 0x1f1   : > { %v496_v50 = vrot.slane %v495_v47, 1 }
 0x1f3   : > { %v497_v53 = vadd.f32 %v496_v50, %v495_v47 }
 0x223   : > { %v480_v43 = vpop.xlane.xlu0 %479 }
 0x224   : > { %v481_v44 = vrot.slane %v480_v43, 4 }
 0x226   : > { %v482_v46 = vadd.f32 %v481_v44, %v480_v43 }
 0x228   : > { %v483_v48 = vrot.slane %v482_v46, 2 }
 0x22a   : > { %v484_v49 = vadd.f32 %v483_v48, %v482_v46 }
 0x22c   : > { %v485_v51 = vrot.slane %v484_v49, 1 }
 0x22e   : > { %v486_v52 = vadd.f32 %v485_v51, %v484_v49 }
 0x230   : > { %646 = vpush %v486_v52 }
 0x231   : > { %648 = vpush %v497_v53 }
 0x261   : > { %s647_s30 = spop %646 }
 0x262   : > { %v500_v54 = vstv %s647_s30  ;;  %s649_s4 = spop %648 }
 0x263   : > { %v501_v55 = vstv %s649_s4 }
 0x264   : > { %v502_v56 = vsel %vm499_vm5, %v500_v54, %v501_v55 }
 0x265   : > { %503 = vst [vmem:[%s225_s27] sm:$0x3] %v502_v56 }
 0x266   : > { %817 = shalt.err (!%p814_p13)
}
 0x267   : > { %654 = dma.vmem_to_hbm [thread:$0]  (%p949_p9), %s518_s28, 32, %s520_s29, %s505_s5  }
 0x268 PF: > { %s531_s3 = sand.u32 1, %s856_s9   ;;  %p664_p0 = pnand %p630_p12, %p956_p11 }
 0x269   : > { %s532_s16 = scalar_lea.sflag [#allocation8], %s531_s3 }
 0x26a   : > { %p665_p1 = pneg %p664_p0 }
 0x26c   : > { %851 = dma.done.wait (%p665_p1), %s532_s16, 32  }
 0x26d   : > { %853 = vsyncadd (%p665_p1), %s532_s16, 4294967264  ;;  %s21_s14 = sadd.s32 1, %s876_s14   ;;  %s1192_s9 = smov %s860_s10 }
 0x26e   : > { %p18_p2 = scmp.ge.s32.totalorder %s21_s14, 4   ;;  %s1193_s10 = smov %s864_s11 }
 0x26f   : > { %s1194_s11 = smov %s954_s23  ;;  %s1195_s12 = smov %s872_s13 }
 0x270   : > { %s1196_s13 = smov %s1198_s17  ;;  %20 = sbr.rel (!%p18_p2) target bundleno = 8 (0x8), region = 98 }
 0x275   :  { %538 = vsyncpa [#allocation7], 1 }
 0x276   :  { %540 = vsyncpa [#allocation7 + $0x1], 1 }
 0x277   :  { %541 = vsyncpa [#allocation10], 1 }
 0x278   :  { %543 = vsyncpa [#allocation10 + $0x1], 1 }
 0x279   :  { %544 = vsyncpa [#allocation8], 1 }
 0x27a   :  { %546 = vsyncpa [#allocation8 + $0x1], 1 }

</bundles_post_ra>
